<compile_context>
chip_gen: v5e
topology: v5e:2x2
jax: 0.10.0
libtpu: 0.0.40
codegen_flags: <defaults>
</compile_context>

<pallas_src>
import jax
import jax.numpy as jnp
from jax.experimental import pallas as pl
from jax.experimental.pallas import tpu as pltpu  # noqa: F401  (TPU backend)

# ----- synthetic "args" (small shapes) ---------------------------------------
M = 4             # args.M  : modules available per layer
L = 3             # args.L  : number of pathnet layers
N_ACTIVE = 3      # args.N  : active modules per layer along the path
NEURON_NUM = 32   # args.neuron_num
READOUT_NUM = 10  # args.readout_num
CIFAR_SVHN = False
IN_DIM = 32 * 32 * 3 if CIFAR_SVHN else 28 * 28
BATCH = 8

GROUPS = N_ACTIVE * NEURON_NUM   # 96 active lanes per layer
HID = 128                        # lane-dense width (96 active + 32 zero pad)


# ----- kernel -----------------------------------------------------------------
def pathnet_forward_kernel(x_ref, w1_ref, b1_ref, w2_ref, b2_ref,
                           w3_ref, b3_ref, wf_ref, bf_ref, out_ref):
    """Whole forward pass on one VMEM-resident tile.

    x_ref : (B, IN_DIM)   f32
    w1_ref: (IN_DIM, 128) f32   concat of 3 active fc1 modules, zero-padded
    w2_ref: (128, 128)    f32   tiled fc2 weight (sum-over-groups folded in)
    w3_ref: (128, 128)    f32   tiled fc3 weight
    wf_ref: (128, 128)    f32   tiled + zero-padded readout weight
    bK_ref: (1, 128)      f32
    out   : (B, 128)      f32   lane-dense; caller slices [:, :READOUT_NUM]
    """
    h = jnp.dot(x_ref[...], w1_ref[...], preferred_element_type=jnp.float32)
    h = jnp.maximum(h + b1_ref[...], 0.0)        # (B,128): groups in lanes 0:96
    h = jnp.dot(h, w2_ref[...], preferred_element_type=jnp.float32)
    h = jnp.maximum(h + b2_ref[...], 0.0)
    h = jnp.dot(h, w3_ref[...], preferred_element_type=jnp.float32)
    h = jnp.maximum(h + b3_ref[...], 0.0)
    out = jnp.dot(h, wf_ref[...], preferred_element_type=jnp.float32)
    out_ref[...] = (out + bf_ref[...]).astype(out_ref.dtype)   # lane-dense store


@jax.jit
def pathnet_forward(x, w1, b1, w2, b2, w3, b3, wf, bf):
    B = x.shape[0]
    flops = 2 * B * (IN_DIM * HID + 3 * HID * HID)
    bytes_accessed = 4 * (x.size + w1.size + w2.size + w3.size + wf.size
                          + b1.size + b2.size + b3.size + bf.size + B * HID)
    out = pl.pallas_call(
        pathnet_forward_kernel,
        out_shape=jax.ShapeDtypeStruct((B, HID), jnp.float32),
        cost_estimate=pl.CostEstimate(flops=flops, transcendentals=0,
                                      bytes_accessed=bytes_accessed),
        # Gridless: all operands (~600 KiB) fit in VMEM on one TensorCore.
        # TODO(synk): for non-toy batches, add grid=(B//TB,) with
        # dimension_semantics=("parallel",) and constant weight index_maps so
        # weights stay VMEM-resident and the second v7x TensorCore is used;
        # size TB against v7x's 64 MiB VMEM, not v5e/v6e's 128 MiB.
    )(x, w1, b1, w2, b2, w3, b3, wf, bf)
    return out[:, :READOUT_NUM]


# ----- deterministic parameter construction ----------------------------------
def _linear_init(key, fan_in, fan_out):
    """PyTorch nn.Linear default: U(-1/sqrt(fan_in), 1/sqrt(fan_in)).
    Weight stored as (in, out) so the kernel computes x @ W + b."""
    kw, kb = jax.random.split(key)
    bound = 1.0 / jnp.sqrt(jnp.float32(fan_in))
    w = jax.random.uniform(kw, (fan_in, fan_out), jnp.float32, -bound, bound)
    b = jax.random.uniform(kb, (fan_out,), jnp.float32, -bound, bound)
    return w, b


def build_params(key):
    keys = jax.random.split(key, 3 * M + 1)

    def bank(ks, fan_in):
        ws, bs = [], []
        for k in ks:
            w, b = _linear_init(k, fan_in, NEURON_NUM)
            ws.append(w)
            bs.append(b)
        return jnp.stack(ws), jnp.stack(bs)

    W1, B1 = bank(keys[0:M], IN_DIM)
    W2, B2 = bank(keys[M:2 * M], NEURON_NUM)
    W3, B3 = bank(keys[2 * M:3 * M], NEURON_NUM)
    Wf, Bf = _linear_init(keys[3 * M], NEURON_NUM, READOUT_NUM)
    return (W1, B1, W2, B2, W3, B3, Wf, Bf)


def prepare_kernel_params(params, path):
    """One-time (per path) layout work: gather active modules, concatenate
    along the output dim, fold the group sum into the next layer's weight by
    vertical tiling, and zero-pad everything to 128 lanes (lane-dense)."""
    W1, B1, W2, B2, W3, B3, Wf, Bf = params

    def cat_active(Wbank, Bbank, idx):
        wc = jnp.concatenate([Wbank[int(i)] for i in idx], axis=1)  # (in, 96)
        bc = jnp.concatenate([Bbank[int(i)] for i in idx], axis=0)  # (96,)
        wc = jnp.pad(wc, ((0, 0), (0, HID - GROUPS)))               # exact zeros
        bc = jnp.pad(bc, (0, HID - GROUPS))
        return wc, bc.reshape(1, HID)

    def tile_groups(w):
        # (32, 128) -> (128, 128): one copy per incoming 32-lane group,
        # zero rows for the 32 pad lanes.
        pad = jnp.zeros((HID - GROUPS, HID), jnp.float32)
        return jnp.concatenate([w] * N_ACTIVE + [pad], axis=0)

    w1c, b1c = cat_active(W1, B1, path[0])   # (784, 128), (1, 128)
    w2c, b2c = cat_active(W2, B2, path[1])   # (32, 128),  (1, 128)
    w3c, b3c = cat_active(W3, B3, path[2])   # (32, 128),  (1, 128)

    wf_pad = jnp.pad(Wf, ((0, 0), (0, HID - READOUT_NUM)))          # (32, 128)
    bf_pad = jnp.pad(Bf, (0, HID - READOUT_NUM)).reshape(1, HID)    # (1, 128)

    return (w1c, b1c,
            tile_groups(w2c), b2c,
            tile_groups(w3c), b3c,
            tile_groups(wf_pad), bf_pad)


# ----- pure-JAX reference mirroring the PyTorch forward -----------------------
def reference_forward(x, params, path):
    W1, B1, W2, B2, W3, B3, Wf, Bf = params

    def layer(h, Wb, Bb, idx):
        y = None
        for i in idx:
            t = jnp.maximum(h @ Wb[int(i)] + Bb[int(i)][None, :], 0.0)
            y = t if y is None else y + t
        return y

    h = layer(x, W1, B1, path[0])
    h = layer(h, W2, B2, path[1])
    h = layer(h, W3, B3, path[2])
    return h @ Wf + Bf


if __name__ == "__main__":
    key = jax.random.PRNGKey(0)
    k_params, k_x = jax.random.split(key)

    params = build_params(k_params)
    # path[l] lists the N active module indices (out of M) for layer l.
    path = [[0, 1, 2], [1, 2, 3], [0, 2, 3]]
    kernel_args = prepare_kernel_params(params, path)

    # Input as flattened "images": (B, 28*28) — equivalent to x.view(-1, 784).
    x = jax.random.normal(k_x, (BATCH, IN_DIM), jnp.float32)

    out = pathnet_forward(x, *kernel_args)
    out = jax.block_until_ready(out)

    ref = reference_forward(x, params, path)
    assert out.shape == (BATCH, READOUT_NUM)
    assert jnp.allclose(out, ref, atol=1e-4, rtol=1e-4), "mismatch vs reference"

    print("KERNEL_OK")
</pallas_src>

<mosaic_0001>
module attributes {stable_mosaic.version = 11 : i64} {
  func.func @pathnet_forward_kernel(%arg0: memref<8x784xf32, #tpu.memory_space<vmem>>, %arg1: memref<784x128xf32, #tpu.memory_space<vmem>>, %arg2: memref<1x128xf32, #tpu.memory_space<vmem>>, %arg3: memref<128x128xf32, #tpu.memory_space<vmem>>, %arg4: memref<1x128xf32, #tpu.memory_space<vmem>>, %arg5: memref<128x128xf32, #tpu.memory_space<vmem>>, %arg6: memref<1x128xf32, #tpu.memory_space<vmem>>, %arg7: memref<128x128xf32, #tpu.memory_space<vmem>>, %arg8: memref<1x128xf32, #tpu.memory_space<vmem>>, %arg9: memref<8x128xf32, #tpu.memory_space<vmem>>) attributes {dimension_semantics = [], scalar_prefetch = 0 : i64, scratch_operands = 0 : i64, tpu.core_type = #tpu.core_type<tc>} {
    %c0 = arith.constant 0 : index
    %c0_0 = arith.constant 0 : index
    %0 = vector.load %arg0[%c0, %c0_0] : memref<8x784xf32, #tpu.memory_space<vmem>>, vector<8x784xf32>
    %c0_1 = arith.constant 0 : index
    %c0_2 = arith.constant 0 : index
    %1 = vector.load %arg1[%c0_1, %c0_2] : memref<784x128xf32, #tpu.memory_space<vmem>>, vector<784x128xf32>
    %cst = arith.constant dense<0.000000e+00> : vector<8x128xf32>
    %2 = tpu.matmul %0, %1, %cst {dimension_numbers = #tpu.dot_dimension_numbers<[1], [0], [0], [1], [0, 0, 1, 1], [], []>} : vector<8x784xf32>, vector<784x128xf32>, vector<8x128xf32> -> vector<8x128xf32>
    %c0_3 = arith.constant 0 : index
    %c0_4 = arith.constant 0 : index
    %3 = vector.load %arg2[%c0_3, %c0_4] : memref<1x128xf32, #tpu.memory_space<vmem>>, vector<1x128xf32>
    %4 = vector.broadcast %3 : vector<1x128xf32> to vector<8x128xf32>
    %5 = arith.addf %2, %4 : vector<8x128xf32>
    %cst_5 = arith.constant 0.000000e+00 : f32
    %6 = vector.broadcast %cst_5 : f32 to vector<8x128xf32>
    %7 = arith.maximumf %5, %6 : vector<8x128xf32>
    %c0_6 = arith.constant 0 : index
    %c0_7 = arith.constant 0 : index
    %8 = vector.load %arg3[%c0_6, %c0_7] : memref<128x128xf32, #tpu.memory_space<vmem>>, vector<128x128xf32>
    %cst_8 = arith.constant dense<0.000000e+00> : vector<8x128xf32>
    %9 = tpu.matmul %7, %8, %cst_8 {dimension_numbers = #tpu.dot_dimension_numbers<[1], [0], [0], [1], [0, 0, 1, 1], [], []>} : vector<8x128xf32>, vector<128x128xf32>, vector<8x128xf32> -> vector<8x128xf32>
    %c0_9 = arith.constant 0 : index
    %c0_10 = arith.constant 0 : index
    %10 = vector.load %arg4[%c0_9, %c0_10] : memref<1x128xf32, #tpu.memory_space<vmem>>, vector<1x128xf32>
    %11 = vector.broadcast %10 : vector<1x128xf32> to vector<8x128xf32>
    %12 = arith.addf %9, %11 : vector<8x128xf32>
    %cst_11 = arith.constant 0.000000e+00 : f32
    %13 = vector.broadcast %cst_11 : f32 to vector<8x128xf32>
    %14 = arith.maximumf %12, %13 : vector<8x128xf32>
    %c0_12 = arith.constant 0 : index
    %c0_13 = arith.constant 0 : index
    %15 = vector.load %arg5[%c0_12, %c0_13] : memref<128x128xf32, #tpu.memory_space<vmem>>, vector<128x128xf32>
    %cst_14 = arith.constant dense<0.000000e+00> : vector<8x128xf32>
    %16 = tpu.matmul %14, %15, %cst_14 {dimension_numbers = #tpu.dot_dimension_numbers<[1], [0], [0], [1], [0, 0, 1, 1], [], []>} : vector<8x128xf32>, vector<128x128xf32>, vector<8x128xf32> -> vector<8x128xf32>
    %c0_15 = arith.constant 0 : index
    %c0_16 = arith.constant 0 : index
    %17 = vector.load %arg6[%c0_15, %c0_16] : memref<1x128xf32, #tpu.memory_space<vmem>>, vector<1x128xf32>
    %18 = vector.broadcast %17 : vector<1x128xf32> to vector<8x128xf32>
    %19 = arith.addf %16, %18 : vector<8x128xf32>
    %cst_17 = arith.constant 0.000000e+00 : f32
    %20 = vector.broadcast %cst_17 : f32 to vector<8x128xf32>
    %21 = arith.maximumf %19, %20 : vector<8x128xf32>
    %c0_18 = arith.constant 0 : index
    %c0_19 = arith.constant 0 : index
    %22 = vector.load %arg7[%c0_18, %c0_19] : memref<128x128xf32, #tpu.memory_space<vmem>>, vector<128x128xf32>
    %cst_20 = arith.constant dense<0.000000e+00> : vector<8x128xf32>
    %23 = tpu.matmul %21, %22, %cst_20 {dimension_numbers = #tpu.dot_dimension_numbers<[1], [0], [0], [1], [0, 0, 1, 1], [], []>} : vector<8x128xf32>, vector<128x128xf32>, vector<8x128xf32> -> vector<8x128xf32>
    %c0_21 = arith.constant 0 : index
    %c0_22 = arith.constant 0 : index
    %24 = vector.load %arg8[%c0_21, %c0_22] : memref<1x128xf32, #tpu.memory_space<vmem>>, vector<1x128xf32>
    %25 = vector.broadcast %24 : vector<1x128xf32> to vector<8x128xf32>
    %26 = arith.addf %23, %25 : vector<8x128xf32>
    %c0_23 = arith.constant 0 : index
    %c0_24 = arith.constant 0 : index
    %27 = vector.load %arg9[%c0_23, %c0_24] : memref<8x128xf32, #tpu.memory_space<vmem>>, vector<8x128xf32>
    tpu.vector_store %arg9[%c0_23, %c0_24], %26 {strides = array<i32>} : memref<8x128xf32, #tpu.memory_space<vmem>>, vector<8x128xf32>,
    return
  }
}

</mosaic_0001>

<bundles_post_ra>
// kernel: pathnet_forward.1
= control target key start
LH: loop header
LB: loop body
LE: loop exit
PB: predicated region body
PF: predicated region fallthrough
CT: control target
= control target key end

     0   :  { %14 = vsyncpa [#allocation3], 0  ;;  %s758_s0 = inlined_call_operand.hbm [shape: f32[8,784], index: 0, kind: input, shape index: {}]   ;;  %s759_s1 = inlined_call_operand.hbm [shape: f32[784,128], index: 1, kind: input, shape index: {}]   ;;  %s760_s2 = inlined_call_operand.vmem [shape: f32[1,128], index: 2, kind: input, shape index: {}]   ;;  %s761_s3 = inlined_call_operand.hbm [shape: f32[128,128], index: 3, kind: input, shape index: {}]   ;;  %s762_s4 = inlined_call_operand.vmem [shape: f32[1,128], index: 4, kind: input, shape index: {}]   ;;  %s763_s5 = inlined_call_operand.hbm [shape: f32[128,128], index: 5, kind: input, shape index: {}]   ;;  %s764_s6 = inlined_call_operand.vmem [shape: f32[1,128], index: 6, kind: input, shape index: {}]   ;;  %s765_s7 = inlined_call_operand.hbm [shape: f32[128,128], index: 7, kind: input, shape index: {}]   ;;  %s766_s8 = inlined_call_operand.vmem [shape: f32[1,128], index: 8, kind: input, shape index: {}]   ;;  %s767_s9 = inlined_call_operand.hbm [shape: f32[8,128], index: 9, kind: output, shape index: {}]  }
   0x1   :  { %15 = vsyncpa [#allocation6], 0 }
   0x2   :  { %16 = vsyncpa [#allocation9], 0  ;;  %s33_s11 = sshll.u32 %s759_s1, 4  ;;  %s34_s11 = int_to_ptr.hbm [resolvable:$true] %s33_s11 }
   0x3   :  { %17 = vsyncpa [#allocation4], 0  ;;  %s670_s12 = smov [#allocation5]   ;;  %s63_s16 = sshll.u32 %s763_s5, 4  ;;  %s64_s16 = int_to_ptr.hbm [resolvable:$true] %s63_s16 }
   0x4   :  { %s35_s13 = sshll.u32 %s670_s12, 4  ;;  %s671_s17 = smov 128   ;;  %s36_s13 = int_to_ptr.vmem [resolvable:$true] %s35_s13 }
   0x5   :  { %s672_s18 = smov 8   ;;  %s673_s19 = smov [#allocation8]  }
   0x6   :  { %41 = dma.hbm_to_vmem [thread:$0]  %s34_s11, 12544, %s36_s13, [#allocation6], %s671_s17, %s671_s17, %s672_s18  }
   0x7   :  { %s65_s20 = sshll.u32 %s673_s19, 4  ;;  %s23_s23 = sshll.u32 %s758_s0, 4  ;;  %s66_s20 = int_to_ptr.vmem [resolvable:$true] %s65_s20  ;;  %s24_s23 = int_to_ptr.hbm [resolvable:$true] %s23_s23 }
   0x8   :  { %71 = dma.hbm_to_vmem [thread:$0]  %s64_s16, 2048, %s66_s20, [#allocation9], %s671_s17, %s671_s17, %s672_s18  }
   0x9   :  { %s48_s25 = sshll.u32 %s761_s3, 4  ;;  %s674_s26 = smov [#allocation2]   ;;  %s49_s25 = int_to_ptr.hbm [resolvable:$true] %s48_s25 }
   0xa   :  { %s25_s27 = sshll.u32 %s674_s26, 4  ;;  %s675_s5 = smov [#allocation7]   ;;  %s26_s27 = int_to_ptr.vmem [resolvable:$true] %s25_s27 }
   0xb   :  { %28 = dma.hbm_to_vmem [thread:$0]  %s24_s23, 896, %s26_s27, [#allocation3]  }
   0xc   :  { %s50_s28 = sshll.u32 %s675_s5, 4  ;;  %s78_s10 = sshll.u32 %s765_s7, 4  ;;  %s51_s28 = int_to_ptr.vmem [resolvable:$true] %s50_s28  ;;  %s79_s10 = int_to_ptr.hbm [resolvable:$true] %s78_s10 }
   0xd   :  { %56 = dma.hbm_to_vmem [thread:$0]  %s49_s25, 2048, %s51_s28, [#allocation6], %s671_s17, %s671_s17, %s672_s18  }
   0xe   :  { %s676_s0 = smov [#allocation10]  }
   0xf   :  { %s80_s11 = sshll.u32 %s676_s0, 4  ;;  %s81_s11 = int_to_ptr.vmem [resolvable:$true] %s80_s11 }
  0x10   :  { %86 = dma.hbm_to_vmem [thread:$0]  %s79_s10, 2048, %s81_s11, [#allocation9], %s671_s17, %s671_s17, %s672_s18  }
  0x11   :  { %662 = dma.done.wait [#allocation3], 896  }
  0x12   :  { %663 = vsyncadd [#allocation3], 4294966400 }
  0x13   :  { %664 = dma.done.wait [#allocation6], 14592  }
  0x14   :  { %665 = vsyncadd [#allocation6], 4294952704 }
  0x15   :  { %666 = dma.done.wait [#allocation9], 4096  }
  0x16   :  { %667 = vsyncadd [#allocation9], 4294963200  ;;  %v131_v0 = vld [vmem:[#allocation5 + $0x78] sm:$0xff]  ;;  %v130_v1 = vld [vmem:[#allocation5 + $0x70] sm:$0xff]  ;;  %vm218_vm0 = vcmask 130048   ;;  %s677_s16 = smov [#allocation11]  }
  0x17   :  { %v147_v2 = vld [vmem:[#allocation5 + $0xf8] sm:$0xff]  ;;  %222 = vmatpush.msra.mxu0 %v131_v0  ;;  %v146_v3 = vld [vmem:[#allocation5 + $0xf0] sm:$0xff]  ;;  %v129_v4 = vld [vmem:[#allocation5 + $0x68] sm:$0xff]  ;;  %s491_s17 = sshll.u32 %s677_s16, 4  ;;  %s493_s20 = sshll.u32 %s767_s9, 4  ;;  %s492_s17 = int_to_ptr.vmem [resolvable:$true] %s491_s17  ;;  %s494_s20 = int_to_ptr.hbm [resolvable:$true] %s493_s20 }
  0x18   :  { %242 = vmatpush.msra.mxu1 %v147_v2  ;;  %v145_v5 = vld [vmem:[#allocation5 + $0xe8] sm:$0xff]  ;;  %v128_v6 = vld [vmem:[#allocation5 + $0x60] sm:$0xff]  ;;  %v127_v8 = vld [vmem:[#allocation5 + $0x58] sm:$0xff] }
  0x19   :  { %223 = vmatpush.msra.mxu0 %v130_v1  ;;  %v144_v7 = vld [vmem:[#allocation5 + $0xe0] sm:$0xff]  ;;  %v143_v9 = vld [vmem:[#allocation5 + $0xd8] sm:$0xff]  ;;  %v126_v10 = vld [vmem:[#allocation5 + $0x50] sm:$0xff] }
  0x1a   :  { %243 = vmatpush.msra.mxu1 %v146_v3  ;;  %v163_v11 = vld [vmem:[#allocation5 + $0x178] sm:$0xff]  ;;  %v142_v12 = vld [vmem:[#allocation5 + $0xd0] sm:$0xff]  ;;  %v161_v15 = vld [vmem:[#allocation5 + $0x168] sm:$0xff] }
  0x1b   :  { %224 = vmatpush.msra.mxu0 %v129_v4  ;;  %262 = vmatpush.msra.mxu2 %v163_v11  ;;  %v162_v13 = vld [vmem:[#allocation5 + $0x170] sm:$0xff]  ;;  %v179_v14 = vld [vmem:[#allocation5 + $0x1f8] sm:$0xff]  ;;  %v125_v17 = vld [vmem:[#allocation5 + $0x48] sm:$0xff] }
  0x1c   :  { %244 = vmatpush.msra.mxu1 %v145_v5  ;;  %v178_v16 = vld [vmem:[#allocation5 + $0x1f0] sm:$0xff]  ;;  %v141_v18 = vld [vmem:[#allocation5 + $0xc8] sm:$0xff]  ;;  %282 = vmatpush.msra.mxu3 %v179_v14  ;;  %v160_v19 = vld [vmem:[#allocation5 + $0x160] sm:$0xff] }
  0x1d   :  { %225 = vmatpush.msra.mxu0 %v128_v6  ;;  %263 = vmatpush.msra.mxu2 %v162_v13  ;;  %v177_v20 = vld [vmem:[#allocation5 + $0x1e8] sm:$0xff]  ;;  %v124_v21 = vld [vmem:[#allocation5 + $0x40] sm:$0xff]  ;;  %v159_v23 = vld [vmem:[#allocation5 + $0x158] sm:$0xff] }
  0x1e   :  { %245 = vmatpush.msra.mxu1 %v144_v7  ;;  %v140_v22 = vld [vmem:[#allocation5 + $0xc0] sm:$0xff]  ;;  %283 = vmatpush.msra.mxu3 %v178_v16  ;;  %v123_v25 = vld [vmem:[#allocation5 + $0x38] sm:$0xff]  ;;  %v158_v27 = vld [vmem:[#allocation5 + $0x150] sm:$0xff] }
  0x1f   :  { %226 = vmatpush.msra.mxu0 %v127_v8  ;;  %264 = vmatpush.msra.mxu2 %v161_v15  ;;  %v176_v24 = vld [vmem:[#allocation5 + $0x1e0] sm:$0xff]  ;;  %v139_v26 = vld [vmem:[#allocation5 + $0xb8] sm:$0xff]  ;;  %v122_v29 = vld [vmem:[#allocation5 + $0x30] sm:$0xff] }
  0x20   :  { %246 = vmatpush.msra.mxu1 %v143_v9  ;;  %284 = vmatpush.msra.mxu3 %v177_v20  ;;  %v175_v28 = vld [vmem:[#allocation5 + $0x1d8] sm:$0xff]  ;;  %v138_v30 = vld [vmem:[#allocation5 + $0xb0] sm:$0xff]  ;;  %v157_v31 = vld [vmem:[#allocation5 + $0x148] sm:$0xff] }
  0x21   :  { %227 = vmatpush.msra.mxu0 %v126_v10  ;;  %265 = vmatpush.msra.mxu2 %v160_v19  ;;  %v174_v32 = vld [vmem:[#allocation5 + $0x1d0] sm:$0xff]  ;;  %v121_v33 = vld [vmem:[#allocation5 + $0x28] sm:$0xff]  ;;  %v156_v35 = vld [vmem:[#allocation5 + $0x140] sm:$0xff] }
  0x22   :  { %247 = vmatpush.msra.mxu1 %v142_v12  ;;  %285 = vmatpush.msra.mxu3 %v176_v24  ;;  %v137_v34 = vld [vmem:[#allocation5 + $0xa8] sm:$0xff]  ;;  %v120_v37 = vld [vmem:[#allocation5 + $0x20] sm:$0xff]  ;;  %v155_v39 = vld [vmem:[#allocation5 + $0x138] sm:$0xff] }
  0x23   :  { %228 = vmatpush.msra.mxu0 %v125_v17  ;;  %266 = vmatpush.msra.mxu2 %v159_v23  ;;  %v173_v36 = vld [vmem:[#allocation5 + $0x1c8] sm:$0xff]  ;;  %v136_v38 = vld [vmem:[#allocation5 + $0xa0] sm:$0xff]  ;;  %v119_v41 = vld [vmem:[#allocation5 + $0x18] sm:$0xff] }
  0x24   :  { %248 = vmatpush.msra.mxu1 %v141_v18  ;;  %286 = vmatpush.msra.mxu3 %v175_v28  ;;  %v172_v40 = vld [vmem:[#allocation5 + $0x1c0] sm:$0xff]  ;;  %v135_v42 = vld [vmem:[#allocation5 + $0x98] sm:$0xff]  ;;  %v154_v43 = vld [vmem:[#allocation5 + $0x130] sm:$0xff] }
  0x25   :  { %229 = vmatpush.msra.mxu0 %v124_v21  ;;  %267 = vmatpush.msra.mxu2 %v158_v27  ;;  %v171_v44 = vld [vmem:[#allocation5 + $0x1b8] sm:$0xff]  ;;  %v118_v45 = vld [vmem:[#allocation5 + $0x10] sm:$0xff]  ;;  %v153_v47 = vld [vmem:[#allocation5 + $0x128] sm:$0xff] }
  0x26   :  { %249 = vmatpush.msra.mxu1 %v140_v22  ;;  %287 = vmatpush.msra.mxu3 %v174_v32  ;;  %v134_v46 = vld [vmem:[#allocation5 + $0x90] sm:$0xff]  ;;  %v117_v49 = vld [vmem:[#allocation5 + $0x8] sm:$0xff]  ;;  %v152_v51 = vld [vmem:[#allocation5 + $0x120] sm:$0xff] }
  0x27   :  { %230 = vmatpush.msra.mxu0 %v123_v25  ;;  %268 = vmatpush.msra.mxu2 %v157_v31  ;;  %v170_v48 = vld [vmem:[#allocation5 + $0x1b0] sm:$0xff]  ;;  %v133_v50 = vld [vmem:[#allocation5 + $0x88] sm:$0xff]  ;;  %v116_v53 = vld [vmem:[#allocation5] sm:$0xff] }
  0x28   :  { %250 = vmatpush.msra.mxu1 %v139_v26  ;;  %288 = vmatpush.msra.mxu3 %v173_v36  ;;  %v169_v52 = vld [vmem:[#allocation5 + $0x1a8] sm:$0xff]  ;;  %v132_v54 = vld [vmem:[#allocation5 + $0x80] sm:$0xff]  ;;  %v195_v55 = vld [vmem:[#allocation5 + $0x278] sm:$0xff] }
  0x29   :  { %231 = vmatpush.msra.mxu0 %v122_v29  ;;  %269 = vmatpush.msra.mxu2 %v156_v35  ;;  %v211_v56 = vld [vmem:[#allocation5 + $0x2f8] sm:$0xff]  ;;  %v168_v58 = vld [vmem:[#allocation5 + $0x1a0] sm:$0xff]  ;;  %v194_v59 = vld [vmem:[#allocation5 + $0x270] sm:$0xff] }
  0x2a   :  { %251 = vmatpush.msra.mxu1 %v138_v30  ;;  %289 = vmatpush.msra.mxu3 %v172_v40  ;;  %v151_v57 = vld [vmem:[#allocation5 + $0x118] sm:$0xff]  ;;  %v210_v60 = vld [vmem:[#allocation5 + $0x2f0] sm:$0xff]  ;;  %v193_v63 = vld [vmem:[#allocation5 + $0x268] sm:$0xff] }
  0x2b   :  { %232 = vmatpush.msra.mxu0 %v121_v33  ;;  %270 = vmatpush.msra.mxu2 %v155_v39  ;;  %v150_v61 = vld [vmem:[#allocation5 + $0x110] sm:$0xff]  ;;  %v167_v62 = vld [vmem:[#allocation5 + $0x198] sm:$0xff]  ;;  %v209_v0 = vld [vmem:[#allocation5 + $0x2e8] sm:$0xff] }
  0x2c   :  { %252 = vmatpush.msra.mxu1 %v137_v34  ;;  %290 = vmatpush.msra.mxu3 %v171_v44  ;;  %v149_v1 = vld [vmem:[#allocation5 + $0x108] sm:$0xff]  ;;  %v166_v2 = vld [vmem:[#allocation5 + $0x190] sm:$0xff]  ;;  %v192_v3 = vld [vmem:[#allocation5 + $0x260] sm:$0xff] }
  0x2d   :  { %233 = vmatpush.msra.mxu0 %v120_v37  ;;  %271 = vmatpush.msra.mxu2 %v154_v43  ;;  %v191_v4 = vld [vmem:[#allocation5 + $0x258] sm:$0xff]  ;;  %v208_v5 = vld [vmem:[#allocation5 + $0x2e0] sm:$0xff]  ;;  %v165_v8 = vld [vmem:[#allocation5 + $0x188] sm:$0xff] }
  0x2e   :  { %253 = vmatpush.msra.mxu1 %v136_v38  ;;  %291 = vmatpush.msra.mxu3 %v170_v48  ;;  %v207_v6 = vld [vmem:[#allocation5 + $0x2d8] sm:$0xff]  ;;  %v148_v7 = vld [vmem:[#allocation5 + $0x100] sm:$0xff]  ;;  %v190_v11 = vld [vmem:[#allocation5 + $0x250] sm:$0xff] }
  0x2f   :  { %234 = vmatpush.msra.mxu0 %v119_v41  ;;  %272 = vmatpush.msra.mxu2 %v153_v47  ;;  %v111_v9 = vld [vmem:[#allocation2 + $0x10] sm:$0xff]  ;;  %v164_v10 = vld [vmem:[#allocation5 + $0x180] sm:$0xff]  ;;  %v206_v12 = vld [vmem:[#allocation5 + $0x2d0] sm:$0xff] }
  0x30   :  { %254 = vmatpush.msra.mxu1 %v135_v42  ;;  %292 = vmatpush.msra.mxu3 %v169_v52  ;;  %v213_v13 = vld [vmem:[#allocation5 + $0x308] sm:$0xff]  ;;  %v112_v17 = vld [vmem:[#allocation2 + $0x18] sm:$0xff]  ;;  %v110_v18 = vld [vmem:[#allocation2 + $0x8] sm:$0xff] }
  0x31   :  { %235 = vmatpush.msra.mxu0 %v118_v45  ;;  %273 = vmatpush.msra.mxu2 %v152_v51  ;;  %v109_v14 = vld [vmem:[#allocation2] sm:$0xff]  ;;  %v188_v19 = vld [vmem:[#allocation5 + $0x240] sm:$0xff]  ;;  %v187_v23 = vld [vmem:[#allocation5 + $0x238] sm:$0xff] }
  0x32   :  { %255 = vmatpush.msra.mxu1 %v134_v46  ;;  %293 = vmatpush.msra.mxu3 %v168_v58  ;;  %v189_v15 = vld [vmem:[#allocation5 + $0x248] sm:$0xff]  ;;  %v204_v20 = vld [vmem:[#allocation5 + $0x2c0] sm:$0xff]  ;;  %v203_v24 = vld [vmem:[#allocation5 + $0x2b8] sm:$0xff] }
  0x33   :  { %236 = vmatpush.msra.mxu0 %v117_v49  ;;  %274 = vmatpush.msra.mxu2 %v151_v57  ;;  %v205_v16 = vld [vmem:[#allocation5 + $0x2c8] sm:$0xff]  ;;  %v212_v21 = vld [vmem:[#allocation5 + $0x300] sm:$0xff]  ;;  %v115_v25 = vld [vmem:[#allocation2 + $0x30] sm:$0xff] }
  0x34   :  { %256 = vmatpush.msra.mxu1 %v133_v50  ;;  %294 = vmatpush.msra.mxu3 %v167_v62  ;;  %v378_v22 = vld [vmem:[#allocation7 + $0x78] sm:$0xff]  ;;  %v377_v26 = vld [vmem:[#allocation7 + $0x70] sm:$0xff]  ;;  %v186_v27 = vld [vmem:[#allocation5 + $0x230] sm:$0xff] }
  0x35   :  { %237 = vmatpush.msra.mxu0 %v116_v53  ;;  %275 = vmatpush.msra.mxu2 %v150_v61  ;;  %v202_v28 = vld [vmem:[#allocation5 + $0x2b0] sm:$0xff]  ;;  %v376_v29 = vld [vmem:[#allocation7 + $0x68] sm:$0xff]  ;;  %v185_v30 = vld [vmem:[#allocation5 + $0x228] sm:$0xff] }
  0x36   :  { %257 = vmatpush.msra.mxu1 %v132_v54  ;;  %295 = vmatpush.msra.mxu3 %v166_v2  ;;  %v201_v31 = vld [vmem:[#allocation5 + $0x2a8] sm:$0xff]  ;;  %v375_v32 = vld [vmem:[#allocation7 + $0x60] sm:$0xff]  ;;  %v184_v33 = vld [vmem:[#allocation5 + $0x220] sm:$0xff] }
  0x37   :  { %302 = vmatpush.msrb.mxu0 %v195_v55  ;;  %276 = vmatpush.msra.mxu2 %v149_v1  ;;  %v200_v34 = vld [vmem:[#allocation5 + $0x2a0] sm:$0xff]  ;;  %v374_v35 = vld [vmem:[#allocation7 + $0x58] sm:$0xff]  ;;  %v183_v36 = vld [vmem:[#allocation5 + $0x218] sm:$0xff] }
  0x38   :  { %322 = vmatpush.msrb.mxu1 %v211_v56  ;;  %296 = vmatpush.msra.mxu3 %v165_v8  ;;  %v199_v37 = vld [vmem:[#allocation5 + $0x298] sm:$0xff]  ;;  %v373_v38 = vld [vmem:[#allocation7 + $0x50] sm:$0xff]  ;;  %v182_v39 = vld [vmem:[#allocation5 + $0x210] sm:$0xff] }
  0x39   :  { %303 = vmatpush.msrb.mxu0 %v194_v59  ;;  %277 = vmatpush.msra.mxu2 %v148_v7  ;;  %v198_v40 = vld [vmem:[#allocation5 + $0x290] sm:$0xff]  ;;  %v372_v41 = vld [vmem:[#allocation7 + $0x48] sm:$0xff]  ;;  %v181_v42 = vld [vmem:[#allocation5 + $0x208] sm:$0xff] }
  0x3a   :  { %323 = vmatpush.msrb.mxu1 %v210_v60  ;;  %278 = vmatmul.f32.vlgmr.msra.gmra.mxu2 %v111_v9  ;;  %v197_v43 = vld [vmem:[#allocation5 + $0x288] sm:$0xff]  ;;  %v180_v44 = vld [vmem:[#allocation5 + $0x200] sm:$0xff]  ;;  %v114_v47 = vld [vmem:[#allocation2 + $0x28] sm:$0xff] }
  0x3b   :  { %304 = vmatpush.msrb.mxu0 %v193_v63  ;;  %297 = vmatpush.msra.mxu3 %v164_v10  ;;  %v196_v45 = vld [vmem:[#allocation5 + $0x280] sm:$0xff]  ;;  %v113_v46 = vld [vmem:[#allocation2 + $0x20] sm:$0xff]  ;;  %v371_v48 = vld [vmem:[#allocation7 + $0x40] sm:$0xff] }
  0x3c   :  { %324 = vmatpush.msrb.mxu1 %v209_v0  ;;  %356 = vmatpush.msrb.mxu2 %v213_v13  ;;  %v370_v49 = vld [vmem:[#allocation7 + $0x38] sm:$0xff]  ;;  %v369_v50 = vld [vmem:[#allocation7 + $0x30] sm:$0xff]  ;;  %v368_v51 = vld [vmem:[#allocation7 + $0x28] sm:$0xff] }
  0x3d   :  { %305 = vmatpush.msrb.mxu0 %v192_v3  ;;  %298 = vmatmul.f32.vlgmr.msra.gmra.mxu3 %v112_v17  ;;  %v367_v52 = vld [vmem:[#allocation7 + $0x20] sm:$0xff]  ;;  %v366_v53 = vld [vmem:[#allocation7 + $0x18] sm:$0xff]  ;;  %v365_v54 = vld [vmem:[#allocation7 + $0x10] sm:$0xff] }
  0x3e   :  { %325 = vmatpush.msrb.mxu1 %v208_v5  ;;  %238 = vmatmul.f32.vlgmr.msra.gmra.mxu0 %v109_v14  ;;  %v364_v55 = vld [vmem:[#allocation7 + $0x8] sm:$0xff]  ;;  %v363_v56 = vld [vmem:[#allocation7] sm:$0xff]  ;;  %v419_v57 = vld [vmem:[#allocation8 + $0x78] sm:$0xff] }
  0x3f   :  { %306 = vmatpush.msrb.mxu0 %v191_v4  ;;  %258 = vmatmul.f32.vlgmr.msra.gmra.mxu1 %v110_v18  ;;  %v418_v58 = vld [vmem:[#allocation8 + $0x70] sm:$0xff]  ;;  %v417_v59 = vld [vmem:[#allocation8 + $0x68] sm:$0xff]  ;;  %v514_v60 = vld [vmem:[%s760_s2] ss:$0 sm:$0xff] }
  0x40   :  { %326 = vmatpush.msrb.mxu1 %v207_v6  ;;  %357 = vmatpush.msrb.mxu2 %v212_v21  ;;  %v416_v61 = vld [vmem:[#allocation8 + $0x60] sm:$0xff]  ;;  %v415_v63 = vld [vmem:[#allocation8 + $0x58] sm:$0xff]  ;;  %v414_v1 = vld [vmem:[#allocation8 + $0x50] sm:$0xff] }
  0x41   :  { %307 = vmatpush.msrb.mxu0 %v190_v11  ;;  %383 = vmatpush.msrb.mxu3 %v378_v22  ;;  %v413_v3 = vld [vmem:[#allocation8 + $0x48] sm:$0xff]  ;;  %v412_v5 = vld [vmem:[#allocation8 + $0x40] sm:$0xff]  ;;  %v411_v7 = vld [vmem:[#allocation8 + $0x38] sm:$0xff] }
  0x42   :  { %327 = vmatpush.msrb.mxu1 %v206_v12  ;;  %505 = vmatmul.msk.f32.vlgmr.msrb.gmra.mxu2 %vm218_vm0, %v115_v25  ;;  %v410_v9 = vld [vmem:[#allocation8 + $0x30] sm:$0xff]  ;;  %v409_v11 = vld [vmem:[#allocation8 + $0x28] sm:$0xff]  ;;  %v408_v13 = vld [vmem:[#allocation8 + $0x20] sm:$0xff] }
  0x43   :  { %308 = vmatpush.msrb.mxu0 %v189_v15  ;;  %384 = vmatpush.msrb.mxu3 %v377_v26  ;;  %v407_v14 = vld [vmem:[#allocation8 + $0x18] sm:$0xff]  ;;  %v406_v22 = vld [vmem:[#allocation8 + $0x10] sm:$0xff] }
  0x44   :  { %328 = vmatpush.msrb.mxu1 %v205_v16  ;;  %424 = vmatpush.msra.mxu2 %v419_v57  ;;  %v460_v25 = vld [vmem:[#allocation10 + $0x78] sm:$0xff]  ;;  %v459_v26 = vld [vmem:[#allocation10 + $0x70] sm:$0xff] }
  0x45   :  { %309 = vmatpush.msrb.mxu0 %v188_v19  ;;  %385 = vmatpush.msrb.mxu3 %v376_v29  ;;  %v456_v29 = vld [vmem:[#allocation10 + $0x58] sm:$0xff] }
  0x46   :  { %329 = vmatpush.msrb.mxu1 %v204_v20  ;;  %425 = vmatpush.msra.mxu2 %v418_v58 }
  0x47   :  { %310 = vmatpush.msrb.mxu0 %v187_v23  ;;  %386 = vmatpush.msrb.mxu3 %v375_v32  ;;  %v405_v23 = vld [vmem:[#allocation8 + $0x8] sm:$0xff]  ;;  %v453_v32 = vld [vmem:[#allocation10 + $0x40] sm:$0xff] }
  0x48   :  { %330 = vmatpush.msrb.mxu1 %v203_v24  ;;  %426 = vmatpush.msra.mxu2 %v417_v59  ;;  %v404_v24 = vld [vmem:[#allocation8] sm:$0xff] }
  0x49   :  { %311 = vmatpush.msrb.mxu0 %v186_v27  ;;  %387 = vmatpush.msrb.mxu3 %v374_v35  ;;  %v458_v27 = vld [vmem:[#allocation10 + $0x68] sm:$0xff] }
  0x4a   :  { %331 = vmatpush.msrb.mxu1 %v202_v28  ;;  %427 = vmatpush.msra.mxu2 %v416_v61  ;;  %v457_v28 = vld [vmem:[#allocation10 + $0x60] sm:$0xff]  ;;  %v450_v35 = vld [vmem:[#allocation10 + $0x28] sm:$0xff] }
  0x4b   :  { %312 = vmatpush.msrb.mxu0 %v185_v30  ;;  %388 = vmatpush.msrb.mxu3 %v373_v38  ;;  %v455_v30 = vld [vmem:[#allocation10 + $0x50] sm:$0xff]  ;;  %v515_v38 = vld [vmem:[%s762_s4] ss:$0 sm:$0xff] }
  0x4c   :  { %332 = vmatpush.msrb.mxu1 %v201_v31  ;;  %428 = vmatpush.msra.mxu2 %v415_v63  ;;  %v454_v31 = vld [vmem:[#allocation10 + $0x48] sm:$0xff] }
  0x4d   :  { %313 = vmatpush.msrb.mxu0 %v184_v33  ;;  %389 = vmatpush.msrb.mxu3 %v372_v41  ;;  %v452_v33 = vld [vmem:[#allocation10 + $0x38] sm:$0xff] }
  0x4e   :  { %333 = vmatpush.msrb.mxu1 %v200_v34  ;;  %429 = vmatpush.msra.mxu2 %v414_v1  ;;  %v451_v34 = vld [vmem:[#allocation10 + $0x30] sm:$0xff] }
  0x4f   :  { %314 = vmatpush.msrb.mxu0 %v183_v36  ;;  %390 = vmatpush.msrb.mxu3 %v371_v48  ;;  %v449_v36 = vld [vmem:[#allocation10 + $0x20] sm:$0xff] }
  0x50   :  { %334 = vmatpush.msrb.mxu1 %v199_v37  ;;  %430 = vmatpush.msra.mxu2 %v413_v3  ;;  %v448_v37 = vld [vmem:[#allocation10 + $0x18] sm:$0xff] }
  0x51   :  { %315 = vmatpush.msrb.mxu0 %v182_v39  ;;  %391 = vmatpush.msrb.mxu3 %v370_v49  ;;  %v517_v49 = vld [vmem:[%s766_s8] ss:$0 sm:$0xff] }
  0x52   :  { %335 = vmatpush.msrb.mxu1 %v198_v40  ;;  %431 = vmatpush.msra.mxu2 %v412_v5 }
  0x53   :  { %316 = vmatpush.msrb.mxu0 %v181_v42  ;;  %392 = vmatpush.msrb.mxu3 %v369_v50  ;;  %v447_v42 = vld [vmem:[#allocation10 + $0x10] sm:$0xff] }
  0x54   :  { %336 = vmatpush.msrb.mxu1 %v197_v43  ;;  %432 = vmatpush.msra.mxu2 %v411_v7  ;;  %v446_v43 = vld [vmem:[#allocation10 + $0x8] sm:$0xff] }
  0x55   :  { %317 = vmatpush.msrb.mxu0 %v180_v44  ;;  %393 = vmatpush.msrb.mxu3 %v368_v51  ;;  %v445_v44 = vld [vmem:[#allocation10] sm:$0xff] }
  0x56   :  { %337 = vmatpush.msrb.mxu1 %v196_v45  ;;  %318 = vmatmul.f32.vlgmr.msrb.gmra.mxu0 %v113_v46  ;;  %v516_v45 = vld [vmem:[%s764_s6] ss:$0 sm:$0xff] }
  0x57   :  { %338 = vmatmul.f32.vlgmr.msrb.gmra.mxu1 %v114_v47  ;;  %394 = vmatpush.msrb.mxu3 %v367_v52 }
  0x58   :  { %433 = vmatpush.msra.mxu2 %v410_v9  ;;  %465 = vmatpush.msra.mxu0 %v460_v25 }
  0x59   :  { %395 = vmatpush.msrb.mxu3 %v366_v53 }
  0x5a   :  { %434 = vmatpush.msra.mxu2 %v409_v11  ;;  %466 = vmatpush.msra.mxu0 %v459_v26 }
  0x5b   :  { %396 = vmatpush.msrb.mxu3 %v365_v54 }
  0x5c   :  { %435 = vmatpush.msra.mxu2 %v408_v13  ;;  %467 = vmatpush.msra.mxu0 %v458_v27 }
  0x5d   :  { %397 = vmatpush.msrb.mxu3 %v364_v55 }
  0x5e   :  { %436 = vmatpush.msra.mxu2 %v407_v14  ;;  %468 = vmatpush.msra.mxu0 %v457_v28 }
  0x5f   :  { %398 = vmatpush.msrb.mxu3 %v363_v56 }
  0x60   :  { %437 = vmatpush.msra.mxu2 %v406_v22  ;;  %469 = vmatpush.msra.mxu0 %v456_v29 }
  0x62   :  { %438 = vmatpush.msra.mxu2 %v405_v23  ;;  %470 = vmatpush.msra.mxu0 %v455_v30 }
  0x64   :  { %439 = vmatpush.msra.mxu2 %v404_v24  ;;  %471 = vmatpush.msra.mxu0 %v454_v31 }
  0x66   :  { %472 = vmatpush.msra.mxu0 %v453_v32 }
  0x68   :  { %473 = vmatpush.msra.mxu0 %v452_v33 }
  0x6a   :  { %474 = vmatpush.msra.mxu0 %v451_v34 }
  0x6c   :  { %475 = vmatpush.msra.mxu0 %v450_v35 }
  0x6e   :  { %476 = vmatpush.msra.mxu0 %v449_v36 }
  0x70   :  { %477 = vmatpush.msra.mxu0 %v448_v37 }
  0x72   :  { %478 = vmatpush.msra.mxu0 %v447_v42 }
  0x74   :  { %479 = vmatpush.msra.mxu0 %v446_v43 }
  0x76   :  { %480 = vmatpush.msra.mxu0 %v445_v44 }
  0xbb   :  { %v239_v62 = vpop.f32.mrf.mxu0 }
  0xbc   :  { %v240_v0 = vadd.f32 %v514_v60, %v239_v62  ;;  %v259_v2 = vpop.f32.mrf.mxu1 }
  0xbd   :  { %v279_v6 = vpop.f32.mrf.mxu2 }
  0xbe   :  { %v260_v4 = vadd.f32 %v259_v2, %v240_v0 }
  0xc0   :  { %v280_v8 = vadd.f32 %v279_v6, %v260_v4  ;;  %v299_v10 = vpop.f32.mrf.mxu3 }
  0xc2   :  { %v300_v12 = vadd.f32 %v299_v10, %v280_v8 }
  0xc5   :  { %v359_v18 = vpop.f32.mrf.mxu2 }
  0xd3   :  { %v319_v15 = vpop.f32.mrf.mxu0 }
  0xd4   :  { %v339_v16 = vpop.f32.mrf.mxu1  ;;  %v320_v17 = vadd.f32 %v319_v15, %v300_v12 }
  0xd6   :  { %v340_v19 = vadd.f32 %v339_v16, %v320_v17 }
  0xd8   :  { %v360_v20 = vadd.f32 %v359_v18, %v340_v19 }
  0xda   :  { %v362_v21 = vmax.f32 %v360_v20, 0.0 }
  0xdc   :  { %399 = vmatmul.f32.vlgmr.msrb.gmra.mxu3 %v362_v21 }
 0x15f   :  { %v400_v39 = vpop.f32.mrf.mxu3 }
 0x160   :  { %v401_v40 = vadd.f32 %v515_v38, %v400_v39 }
 0x162   :  { %v403_v41 = vmax.f32 %v401_v40, 0.0 }
 0x164   :  { %440 = vmatmul.f32.vlgmr.msra.gmra.mxu2 %v403_v41 }
 0x1e7   :  { %v441_v46 = vpop.f32.mrf.mxu2 }
 0x1e8   :  { %v442_v47 = vadd.f32 %v516_v45, %v441_v46 }
 0x1ea   :  { %v444_v48 = vmax.f32 %v442_v47, 0.0 }
 0x1ec   :  { %481 = vmatmul.f32.vlgmr.msra.gmra.mxu0 %v444_v48 }
 0x269   :  { %v482_v50 = vpop.f32.mrf.mxu0 }
 0x26a   :  { %v483_v51 = vadd.f32 %v517_v49, %v482_v50 }
 0x26c   :  { %485 = vst [vmem:[#allocation11] sm:$0xff] %v483_v51 }
 0x26d   :  { %496 = dma.vmem_to_hbm [thread:$0]  %s492_s17, 128, %s494_s20, [#allocation4]  }
 0x26e   :  { %668 = dma.done.wait [#allocation4], 128  }
 0x26f   :  { %669 = vsyncadd [#allocation4], 4294967168 }
 0x270   :  { %501 = vsyncpa [#allocation3], 1 }
 0x271   :  { %502 = vsyncpa [#allocation6], 1 }
 0x272   :  { %503 = vsyncpa [#allocation9], 1 }
 0x273   :  { %504 = vsyncpa [#allocation4], 1 }

</bundles_post_ra>
